<compile_context>
chip_gen: v7x
topology: tpu7x:2x2x1
jax: 0.10.0
libtpu: 0.0.40
codegen_flags: <defaults>
</compile_context>

<pallas_src>
import functools

import numpy as np
import jax
import jax.numpy as jnp
from jax.experimental import pallas as pl
from jax.experimental.pallas import tpu as pltpu


def _round_up(n, m):
    return ((n + m - 1) // m) * m


def _default_bf16_act():
    # bf16 tanh only pays off where the EUP has native bf16 (v6e / v7x).
    try:
        kind = jax.devices()[0].device_kind.lower()
    except Exception:
        return False
    return ("v6" in kind) or ("v7" in kind)


def _sigmoid(x, bf16_act):
    # sigmoid(x) == 0.5 * (tanh(x/2) + 1): single EUP op instead of exp + divide.
    if bf16_act:
        x = x.astype(jnp.bfloat16)
    y = 0.5 * (jnp.tanh(0.5 * x) + 1.0)
    return y.astype(jnp.float32)


def _fused_mlp_kernel(x_ref, wc_ref, bc_ref, w1t_ref, b1_ref,
                      w2t_ref, b2_ref, w3_ref, b3_ref, o_ref, *, bf16_act):
    # x_ref: (tn, 49) flattened 7x7 single-channel image tile.
    # Conv(7x7, valid) == dense matmul over the 49 pixels (MXU), output (tn, sz).
    h = jnp.dot(x_ref[...], wc_ref[...], preferred_element_type=jnp.float32)
    # One XLU transpose -> lane-dense (sz, tn) activations for the rest of the net.
    h = h.T + bc_ref[...]                                  # (sz, tn) + (sz, 1)
    h = _sigmoid(h, bf16_act)
    # Linear(sz, sz) layers as dot((sz,sz), (sz,tn)); Dropout(p=0) is identity.
    h = jnp.dot(w1t_ref[...], h, preferred_element_type=jnp.float32) + b1_ref[...]
    h = _sigmoid(h, bf16_act)
    h = jnp.dot(w2t_ref[...], h, preferred_element_type=jnp.float32) + b2_ref[...]
    h = _sigmoid(h, bf16_act)
    # Linear(sz, 1): VPU multiply + sublane (XLU) reduce -> lane-dense (1, tn) row.
    o_ref[...] = jnp.sum(h * w3_ref[...], axis=0, keepdims=True) + b3_ref[...]


def seven_by_seven_forward(x_nchw, params, tile_n=4096, bf16_act=None):
    """x_nchw: (N, 1, 7, 7) float32. Returns (N, 1) float32."""
    N = x_nchw.shape[0]
    assert x_nchw.shape[1:] == (1, 7, 7), "module requires (N, 1, 7, 7) input"
    x_flat = x_nchw.reshape(N, 49)   # row-major (H, W) flatten matches conv dot order

    if bf16_act is None:
        bf16_act = _default_bf16_act()

    wc, bc, w1, b1, w2, b2, w3, b3 = params
    sz = wc.shape[1]
    # Pre-arrange parameters for the (sz, tn) activation layout (tiny, one-time).
    bc_c = bc.reshape(sz, 1)
    w1t, b1_c = w1.T, b1.reshape(sz, 1)
    w2t, b2_c = w2.T, b2.reshape(sz, 1)
    w3_c, b3_c = w3.reshape(sz, 1), b3.reshape(1, 1)

    # Batch tile: multiple of 8 sublanes, large to amortize per-grid-step overhead,
    # capped at ceil(N/2) so the "parallel" batch axis has >=2 steps (v7x: 2 TCs).
    # No jnp.pad: Pallas boundary blocks cover the tail; extra rows are sliced off.
    tn = min(_round_up(tile_n, 8), max(8, _round_up(pl.cdiv(N, 2), 8)))
    n_tiles = pl.cdiv(N, tn)

    def resident(shape):
        # Constant index_map -> block stays VMEM-resident across grid steps.
        return pl.BlockSpec(shape, lambda i: (0, 0))

    out = pl.pallas_call(
        functools.partial(_fused_mlp_kernel, bf16_act=bf16_act),
        out_shape=jax.ShapeDtypeStruct((n_tiles, 1, tn), jnp.float32),
        grid=(n_tiles,),
        in_specs=[
            pl.BlockSpec((tn, 49), lambda i: (i, 0)),   # x tile (double-buffered)
            resident((49, sz)), resident((sz, 1)),      # conv-as-matmul weight / bias
            resident((sz, sz)), resident((sz, 1)),      # linear 1 (transposed)
            resident((sz, sz)), resident((sz, 1)),      # linear 2 (transposed)
            resident((sz, 1)), resident((1, 1)),        # linear 3 column + bias
        ],
        # Lane-dense (1, tn) output blocks (no masked 1-lane-wide stores).
        out_specs=pl.BlockSpec((None, 1, tn), lambda i: (i, 0, 0)),
        compiler_params=pltpu.CompilerParams(
            dimension_semantics=("parallel",)),         # v7x: shard batch over 2 TCs
    )(x_flat, wc, bc_c, w1t, b1_c, w2t, b2_c, w3_c, b3_c)

    return out.reshape(n_tiles * tn)[:N].reshape(N, 1)


def init_params(key, sz):
    """Deterministic parameter init. Weights stored as (in_features, out_features)."""
    ks = jax.random.split(key, 8)
    scale = 0.1
    # conv weight: PyTorch shape (sz, 1, 7, 7) -> flattened & transposed -> (49, sz)
    wc = scale * jax.random.normal(ks[0], (49, sz), jnp.float32)
    bc = scale * jax.random.normal(ks[1], (1, sz), jnp.float32)
    w1 = scale * jax.random.normal(ks[2], (sz, sz), jnp.float32)
    b1 = scale * jax.random.normal(ks[3], (1, sz), jnp.float32)
    w2 = scale * jax.random.normal(ks[4], (sz, sz), jnp.float32)
    b2 = scale * jax.random.normal(ks[5], (1, sz), jnp.float32)
    w3 = scale * jax.random.normal(ks[6], (sz, 1), jnp.float32)
    b3 = scale * jax.random.normal(ks[7], (1, 1), jnp.float32)
    return (wc, bc, w1, b1, w2, b2, w3, b3)


def reference_forward(x_nchw, params):
    """Pure-JAX reference reproducing the PyTorch forward (eval mode / p=0)."""
    wc, bc, w1, b1, w2, b2, w3, b3 = params
    N = x_nchw.shape[0]
    x = x_nchw.reshape(N, 49)
    h = jax.nn.sigmoid(x @ wc + bc)      # conv(7x7, valid) + sigmoid
    h = jax.nn.sigmoid(h @ w1 + b1)      # Linear + Sigmoid (+ Dropout(0) = id)
    h = jax.nn.sigmoid(h @ w2 + b2)      # Linear + Sigmoid (+ Dropout(0) = id)
    return h @ w3 + b3                   # Linear(sz, 1)


if __name__ == "__main__":
    sz = 32
    key = jax.random.PRNGKey(0)
    k_x, k_p, k_x2 = jax.random.split(key, 3)
    params = init_params(k_p, sz)

    # Small batch, f32 activations: single grid step, tight correctness check.
    N = 8
    x = jax.random.normal(k_x, (N, 1, 7, 7), jnp.float32)
    out = jax.block_until_ready(seven_by_seven_forward(x, params, bf16_act=False))
    ref = reference_forward(x, params)
    assert out.shape == (N, 1)
    np.testing.assert_allclose(np.asarray(out), np.asarray(ref), rtol=1e-5, atol=1e-5)

    # Larger non-multiple batch with a small tile: exercises the multi-step grid,
    # resident weights, boundary (non-divisible) blocks, and the auto bf16 path.
    N2 = 200
    x2 = jax.random.normal(k_x2, (N2, 1, 7, 7), jnp.float32)
    out2 = jax.block_until_ready(seven_by_seven_forward(x2, params, tile_n=64))
    ref2 = reference_forward(x2, params)
    assert out2.shape == (N2, 1)
    tol = 3e-2 if _default_bf16_act() else 1e-5   # bf16 tanh on v6e/v7x
    np.testing.assert_allclose(np.asarray(out2), np.asarray(ref2), rtol=tol, atol=tol)

    print("KERNEL_OK")
</pallas_src>

<mosaic_0001>
module attributes {stable_mosaic.version = 11 : i64} {
  func.func @_fused_mlp_kernel(%arg0: i32, %arg1: memref<8x49xf32, #tpu.memory_space<vmem>>, %arg2: memref<49x32xf32, #tpu.memory_space<vmem>>, %arg3: memref<32x1xf32, #tpu.memory_space<vmem>>, %arg4: memref<32x32xf32, #tpu.memory_space<vmem>>, %arg5: memref<32x1xf32, #tpu.memory_space<vmem>>, %arg6: memref<32x32xf32, #tpu.memory_space<vmem>>, %arg7: memref<32x1xf32, #tpu.memory_space<vmem>>, %arg8: memref<32x1xf32, #tpu.memory_space<vmem>>, %arg9: memref<1x1xf32, #tpu.memory_space<vmem>>, %arg10: memref<1x1x8xf32, #tpu.memory_space<vmem>>) attributes {dimension_semantics = [#tpu.dimension_semantics<parallel>], iteration_bounds = array<i64: 1>, scalar_prefetch = 0 : i64, scratch_operands = 0 : i64, tpu.core_type = #tpu.core_type<tc>, window_params = [{transform_indices = @transform_0, window_bounds = array<i64: 8, 49>}, {pipeline_mode = #tpu.pipeline_mode<synchronous>, transform_indices = @transform_1, window_bounds = array<i64: 49, 32>}, {pipeline_mode = #tpu.pipeline_mode<synchronous>, transform_indices = @transform_2, window_bounds = array<i64: 32, 1>}, {pipeline_mode = #tpu.pipeline_mode<synchronous>, transform_indices = @transform_3, window_bounds = array<i64: 32, 32>}, {pipeline_mode = #tpu.pipeline_mode<synchronous>, transform_indices = @transform_4, window_bounds = array<i64: 32, 1>}, {pipeline_mode = #tpu.pipeline_mode<synchronous>, transform_indices = @transform_5, window_bounds = array<i64: 32, 32>}, {pipeline_mode = #tpu.pipeline_mode<synchronous>, transform_indices = @transform_6, window_bounds = array<i64: 32, 1>}, {pipeline_mode = #tpu.pipeline_mode<synchronous>, transform_indices = @transform_7, window_bounds = array<i64: 32, 1>}, {pipeline_mode = #tpu.pipeline_mode<synchronous>, transform_indices = @transform_8, window_bounds = array<i64: 1, 1>}, {transform_indices = @transform_9, window_bounds = array<i64: 1, 1, 8>}]} {
    %c0 = arith.constant 0 : index
    %c0_0 = arith.constant 0 : index
    %0 = vector.load %arg1[%c0, %c0_0] : memref<8x49xf32, #tpu.memory_space<vmem>>, vector<8x49xf32>
    %c0_1 = arith.constant 0 : index
    %c0_2 = arith.constant 0 : index
    %1 = vector.load %arg2[%c0_1, %c0_2] : memref<49x32xf32, #tpu.memory_space<vmem>>, vector<49x32xf32>
    %cst = arith.constant dense<0.000000e+00> : vector<8x32xf32>
    %2 = tpu.matmul %0, %1, %cst {dimension_numbers = #tpu.dot_dimension_numbers<[1], [0], [0], [1], [0, 0, 1, 1], [], []>} : vector<8x49xf32>, vector<49x32xf32>, vector<8x32xf32> -> vector<8x32xf32>
    %3 = tpu.transpose %2, [1, 0] : vector<8x32xf32> -> vector<32x8xf32>
    %c0_3 = arith.constant 0 : index
    %c0_4 = arith.constant 0 : index
    %4 = vector.load %arg3[%c0_3, %c0_4] : memref<32x1xf32, #tpu.memory_space<vmem>>, vector<32x1xf32>
    %5 = vector.broadcast %4 : vector<32x1xf32> to vector<32x8xf32>
    %6 = arith.addf %3, %5 : vector<32x8xf32>
    %cst_5 = arith.constant 5.000000e-01 : f32
    %7 = vector.broadcast %cst_5 : f32 to vector<32x8xf32>
    %8 = arith.mulf %7, %6 : vector<32x8xf32>
    %9 = math.tanh %8 : vector<32x8xf32>
    %cst_6 = arith.constant 1.000000e+00 : f32
    %10 = vector.broadcast %cst_6 : f32 to vector<32x8xf32>
    %11 = arith.addf %9, %10 : vector<32x8xf32>
    %cst_7 = arith.constant 5.000000e-01 : f32
    %12 = vector.broadcast %cst_7 : f32 to vector<32x8xf32>
    %13 = arith.mulf %12, %11 : vector<32x8xf32>
    %c0_8 = arith.constant 0 : index
    %c0_9 = arith.constant 0 : index
    %14 = vector.load %arg4[%c0_8, %c0_9] : memref<32x32xf32, #tpu.memory_space<vmem>>, vector<32x32xf32>
    %cst_10 = arith.constant dense<0.000000e+00> : vector<32x8xf32>
    %15 = tpu.matmul %14, %13, %cst_10 {dimension_numbers = #tpu.dot_dimension_numbers<[1], [0], [0], [1], [0, 0, 1, 1], [], []>} : vector<32x32xf32>, vector<32x8xf32>, vector<32x8xf32> -> vector<32x8xf32>
    %c0_11 = arith.constant 0 : index
    %c0_12 = arith.constant 0 : index
    %16 = vector.load %arg5[%c0_11, %c0_12] : memref<32x1xf32, #tpu.memory_space<vmem>>, vector<32x1xf32>
    %17 = vector.broadcast %16 : vector<32x1xf32> to vector<32x8xf32>
    %18 = arith.addf %15, %17 : vector<32x8xf32>
    %cst_13 = arith.constant 5.000000e-01 : f32
    %19 = vector.broadcast %cst_13 : f32 to vector<32x8xf32>
    %20 = arith.mulf %19, %18 : vector<32x8xf32>
    %21 = math.tanh %20 : vector<32x8xf32>
    %cst_14 = arith.constant 1.000000e+00 : f32
    %22 = vector.broadcast %cst_14 : f32 to vector<32x8xf32>
    %23 = arith.addf %21, %22 : vector<32x8xf32>
    %cst_15 = arith.constant 5.000000e-01 : f32
    %24 = vector.broadcast %cst_15 : f32 to vector<32x8xf32>
    %25 = arith.mulf %24, %23 : vector<32x8xf32>
    %c0_16 = arith.constant 0 : index
    %c0_17 = arith.constant 0 : index
    %26 = vector.load %arg6[%c0_16, %c0_17] : memref<32x32xf32, #tpu.memory_space<vmem>>, vector<32x32xf32>
    %cst_18 = arith.constant dense<0.000000e+00> : vector<32x8xf32>
    %27 = tpu.matmul %26, %25, %cst_18 {dimension_numbers = #tpu.dot_dimension_numbers<[1], [0], [0], [1], [0, 0, 1, 1], [], []>} : vector<32x32xf32>, vector<32x8xf32>, vector<32x8xf32> -> vector<32x8xf32>
    %c0_19 = arith.constant 0 : index
    %c0_20 = arith.constant 0 : index
    %28 = vector.load %arg7[%c0_19, %c0_20] : memref<32x1xf32, #tpu.memory_space<vmem>>, vector<32x1xf32>
    %29 = vector.broadcast %28 : vector<32x1xf32> to vector<32x8xf32>
    %30 = arith.addf %27, %29 : vector<32x8xf32>
    %cst_21 = arith.constant 5.000000e-01 : f32
    %31 = vector.broadcast %cst_21 : f32 to vector<32x8xf32>
    %32 = arith.mulf %31, %30 : vector<32x8xf32>
    %33 = math.tanh %32 : vector<32x8xf32>
    %cst_22 = arith.constant 1.000000e+00 : f32
    %34 = vector.broadcast %cst_22 : f32 to vector<32x8xf32>
    %35 = arith.addf %33, %34 : vector<32x8xf32>
    %cst_23 = arith.constant 5.000000e-01 : f32
    %36 = vector.broadcast %cst_23 : f32 to vector<32x8xf32>
    %37 = arith.mulf %36, %35 : vector<32x8xf32>
    %c0_24 = arith.constant 0 : index
    %c0_25 = arith.constant 0 : index
    %38 = vector.load %arg8[%c0_24, %c0_25] : memref<32x1xf32, #tpu.memory_space<vmem>>, vector<32x1xf32>
    %39 = vector.broadcast %38 : vector<32x1xf32> to vector<32x8xf32>
    %40 = arith.mulf %37, %39 : vector<32x8xf32>
    %cst_26 = arith.constant dense<0.000000e+00> : vector<8xf32>
    %41 = vector.multi_reduction <add>, %40, %cst_26 [0] : vector<32x8xf32> to vector<8xf32>
    %42 = vector.shape_cast %41 : vector<8xf32> to vector<1x8xf32>
    %c0_27 = arith.constant 0 : index
    %c0_28 = arith.constant 0 : index
    %43 = vector.load %arg9[%c0_27, %c0_28] : memref<1x1xf32, #tpu.memory_space<vmem>>, vector<1x1xf32>
    %44 = vector.broadcast %43 : vector<1x1xf32> to vector<1x8xf32>
    %45 = arith.addf %42, %44 : vector<1x8xf32>
    %c0_29 = arith.constant 0 : index
    %c0_30 = arith.constant 0 : index
    %c0_31 = arith.constant 0 : index
    %46 = vector.load %arg10[%c0_29, %c0_30, %c0_31] : memref<1x1x8xf32, #tpu.memory_space<vmem>>, vector<1x1x8xf32>
    %47 = vector.shape_cast %46 : vector<1x1x8xf32> to vector<1x8xf32>
    %48 = vector.shape_cast %45 : vector<1x8xf32> to vector<1x1x8xf32>
    tpu.vector_store %arg10[%c0_29, %c0_30, %c0_31], %48 {strides = array<i32>} : memref<1x1x8xf32, #tpu.memory_space<vmem>>, vector<1x1x8xf32>,
    return
  }
  func.func @transform_0(%arg0: i32) -> (i32, i32) {
    %c0_i32 = arith.constant 0 : i32
    %c0_i32_0 = arith.constant 0 : i32
    return %arg0, %c0_i32 : i32, i32
  }
  func.func @transform_1(%arg0: i32) -> (i32, i32) {
    %c0_i32 = arith.constant 0 : i32
    %c0_i32_0 = arith.constant 0 : i32
    %c0_i32_1 = arith.constant 0 : i32
    return %c0_i32, %c0_i32_0 : i32, i32
  }
  func.func @transform_2(%arg0: i32) -> (i32, i32) {
    %c0_i32 = arith.constant 0 : i32
    %c0_i32_0 = arith.constant 0 : i32
    %c0_i32_1 = arith.constant 0 : i32
    return %c0_i32, %c0_i32_0 : i32, i32
  }
  func.func @transform_3(%arg0: i32) -> (i32, i32) {
    %c0_i32 = arith.constant 0 : i32
    %c0_i32_0 = arith.constant 0 : i32
    %c0_i32_1 = arith.constant 0 : i32
    return %c0_i32, %c0_i32_0 : i32, i32
  }
  func.func @transform_4(%arg0: i32) -> (i32, i32) {
    %c0_i32 = arith.constant 0 : i32
    %c0_i32_0 = arith.constant 0 : i32
    %c0_i32_1 = arith.constant 0 : i32
    return %c0_i32, %c0_i32_0 : i32, i32
  }
  func.func @transform_5(%arg0: i32) -> (i32, i32) {
    %c0_i32 = arith.constant 0 : i32
    %c0_i32_0 = arith.constant 0 : i32
    %c0_i32_1 = arith.constant 0 : i32
    return %c0_i32, %c0_i32_0 : i32, i32
  }
  func.func @transform_6(%arg0: i32) -> (i32, i32) {
    %c0_i32 = arith.constant 0 : i32
    %c0_i32_0 = arith.constant 0 : i32
    %c0_i32_1 = arith.constant 0 : i32
    return %c0_i32, %c0_i32_0 : i32, i32
  }
  func.func @transform_7(%arg0: i32) -> (i32, i32) {
    %c0_i32 = arith.constant 0 : i32
    %c0_i32_0 = arith.constant 0 : i32
    %c0_i32_1 = arith.constant 0 : i32
    return %c0_i32, %c0_i32_0 : i32, i32
  }
  func.func @transform_8(%arg0: i32) -> (i32, i32) {
    %c0_i32 = arith.constant 0 : i32
    %c0_i32_0 = arith.constant 0 : i32
    %c0_i32_1 = arith.constant 0 : i32
    return %c0_i32, %c0_i32_0 : i32, i32
  }
  func.func @transform_9(%arg0: i32) -> (i32, i32, i32) {
    %c0_i32 = arith.constant 0 : i32
    %c0_i32_0 = arith.constant 0 : i32
    %c0_i32_1 = arith.constant 0 : i32
    return %arg0, %c0_i32, %c0_i32_0 : i32, i32, i32
  }
}

</mosaic_0001>

<bundles_post_ra>
// kernel: tpu_custom_call.1
= control target key start
LH: loop header
LB: loop body
LE: loop exit
PB: predicated region body
PF: predicated region fallthrough
CT: control target
= control target key end

     0   :  { %s886_s0 = inlined_call_operand.vmem [shape: f32[8,49], index: 0, kind: input, shape index: {}]   ;;  %s887_s1 = inlined_call_operand.vmem [shape: f32[49,32], index: 1, kind: input, shape index: {}]   ;;  %s888_s2 = inlined_call_operand.vmem [shape: f32[32,1], index: 2, kind: input, shape index: {}]   ;;  %s889_s3 = inlined_call_operand.vmem [shape: f32[32,32], index: 3, kind: input, shape index: {}]   ;;  %s890_s4 = inlined_call_operand.vmem [shape: f32[32,1], index: 4, kind: input, shape index: {}]   ;;  %s891_s5 = inlined_call_operand.vmem [shape: f32[32,32], index: 5, kind: input, shape index: {}]   ;;  %s892_s6 = inlined_call_operand.vmem [shape: f32[32,1], index: 6, kind: input, shape index: {}]   ;;  %s893_s7 = inlined_call_operand.vmem [shape: f32[32,1], index: 7, kind: input, shape index: {}]   ;;  %s894_s8 = inlined_call_operand.<no memory space> [shape: f32[1,1], index: 8, kind: input, shape index: {}]   ;;  %s895_s9 = inlined_call_operand.hbm [shape: f32[1,1,8], index: 9, kind: output, shape index: {}]  }
   0x1   :  { %v14_v0 = vstv %s894_s8 }
   0x2   :  { %15 = vst [vmem:[#allocation2] sm:$0x1] %v14_v0 }
   0x3   :  { %v36_v1 = vld [vmem:[%s887_s1] sm:$0xff]  ;;  %v37_v2 = vld [vmem:[%s887_s1 + $0x8] sm:$0xff]  ;;  %v38_v3 = vld [vmem:[%s887_s1 + $0x10] sm:$0xff]  ;;  %v708_v4 = vmov 0.0|0.0   ;;  %vm709_vm0 = vmmov 0   ;;  %v710_v7 = vmov 0.0  }
   0x4   :  { %628 = vmatprep.subr.bf16.mxu0 %v708_v4  ;;  %v629_v5 = vpack.c.bf16 %v37_v2, %v36_v1  ;;  %v39_v6 = vld [vmem:[%s887_s1 + $0x18] sm:$0xff]  ;;  %597 = vmatprep.mubr.msk.f32.mxu0 %vm709_vm0, %v710_v7  ;;  %v711_v8 = vmov 0   ;;  %v155_v9 = vld [vmem:[%s888_s2 + $0x10] sm:$0xff]  ;;  %v153_v11 = vld [vmem:[%s888_s2] sm:$0xff] }
   0x5   :  { %659 = vset.pattern.permute.xlu1 %v711_v8  ;;  %v632_v10 = vpack.c.bf16 %v39_v6, %v38_v3  ;;  %v40_v12 = vld [vmem:[%s887_s1 + $0x20] sm:$0xff]  ;;  %v41_v13 = vld [vmem:[%s887_s1 + $0x28] sm:$0xff]  ;;  %658 = vset.pattern.permute.xlu0 %v711_v8  ;;  %v156_v14 = vld [vmem:[%s888_s2 + $0x18] sm:$0xff] }
   0x6   :  { %630 = vmatpush3.bf16.msra.mxu0 %v629_v5  ;;  %169 = vperm.xlu1 %659, %v155_v9   ;;  %v154_v15 = vld [vmem:[%s888_s2 + $0x8] sm:$0xff]  ;;  %v635_v16 = vpack.c.bf16 %v41_v13, %v40_v12 }
   0x7   :  { %631 = vmatprep.subr.bf16.mxu0 %v708_v4  ;;  %159 = vperm.xlu0 %658, %v153_v11  }
   0xa   :  { %633 = vmatpush3.bf16.msra.mxu0 %v632_v10  ;;  %174 = vperm.xlu1 %659, %v156_v14  }
   0xb   :  { %16 = vsyncpa [#allocation4], 0  ;;  %634 = vmatprep.subr.bf16.mxu0 %v708_v4  ;;  %v201_v17 = vld [vmem:[%s890_s4] sm:$0xff]  ;;  %164 = vperm.xlu0 %658, %v154_v15   ;;  %v42_v18 = vld [vmem:[%s887_s1 + $0x30] sm:$0x1]  ;;  %vm47_vm1 = vcmask 1040384  }
   0xc   :  { %v202_v19 = vld [vmem:[%s890_s4 + $0x8] sm:$0xff]  ;;  %v35_v20 = vld [vmem:[%s886_s0] sm:$0xff]  ;;  %vm43_vm2 = vcmask 400384   ;;  %v203_v21 = vld [vmem:[%s890_s4 + $0x10] sm:$0xff]  ;;  %vm225_vm3 = vcmask 261120   ;;  %vm508_vm4 = vcmask 64512  }
   0xd   :  { %v204_v22 = vld [vmem:[%s890_s4 + $0x18] sm:$0xff]  ;;  %v343_v23 = vld [vmem:[%s892_s6] sm:$0xff]  ;;  %v344_v24 = vld [vmem:[%s892_s6 + $0x8] sm:$0xff]  ;;  %vm533_vm5 = vcmask 57344  }
   0xe   :  { %636 = vmatpush3.bf16.msra.mxu0 %v635_v16  ;;  %207 = vperm.xlu1 %659, %v201_v17   ;;  %v345_v25 = vld [vmem:[%s892_s6 + $0x10] sm:$0xff]  ;;  %v346_v26 = vld [vmem:[%s892_s6 + $0x18] sm:$0xff]  ;;  %v481_v27 = vld [vmem:[%s893_s7 + $0x8] sm:$0xff] }
   0xf   :  { %595 = vmatprep.subr.mxu0 %v710_v7  ;;  %v482_v28 = vld [vmem:[%s893_s7 + $0x10] sm:$0xff]  ;;  %v483_v29 = vld [vmem:[%s893_s7 + $0x18] sm:$0xff]  ;;  %v522_v30 = vld [vmem:[#allocation2] sm:$0x1] }
  0x10   :  { %v197_v33 = vld [vmem:[%s889_s3] sm:$0xff]  ;;  %v198_v1 = vld [vmem:[%s889_s3 + $0x8] sm:$0xff]  ;;  %v199_v2 = vld [vmem:[%s889_s3 + $0x10] sm:$0xff] }
  0x11   :  { %608 = vmatprep.mubr.msk.f32.mxu1 %vm225_vm3, %v197_v33  ;;  %v480_v34 = vld [vmem:[%s893_s7] sm:$0xff]  ;;  %v200_v3 = vld [vmem:[%s889_s3 + $0x18] sm:$0xff] }
  0x12   :  { %596 = vmatpush3.msk.msra.mxu0 %vm47_vm1, %v42_v18  ;;  %212 = vperm.xlu1 %659, %v202_v19   ;;  %v339_v4 = vld [vmem:[%s891_s5] sm:$0xff] }
  0x13   :  { %598 = vmatmul.mubr.msk.f32.vlgmr.msra.gmra.mrb[0].mxu0 %vm43_vm2, %v35_v20 }
  0x16   :  { %217 = vperm.xlu1 %659, %v203_v21  }
  0x1a   :  { %222 = vperm.xlu1 %659, %v204_v22  }
  0x1e   :  { %349 = vperm.xlu1 %659, %v343_v23  }
  0x22   :  { %354 = vperm.xlu1 %659, %v344_v24  }
  0x26   :  { %359 = vperm.xlu1 %659, %v345_v25  }
  0x2a   :  { %364 = vperm.xlu1 %659, %v346_v26  }
  0x2e   :  { %491 = vperm.xlu1 %659, %v481_v27  }
  0x32   :  { %496 = vperm.xlu1 %659, %v482_v28  }
  0x36   :  { %501 = vperm.xlu1 %659, %v483_v29  }
  0x3a   :  { %525 = vperm.xlu1 %659, %v522_v30  }
  0x85   :  { %v170_v42 = vpop.permute.xlu1 %169 }
  0x86   :  { %v160_v35 = vpop.permute.xlu0 %159 }
  0x89   :  { %v175_v47 = vpop.permute.xlu1 %174 }
  0x8a   :  { %v165_v36 = vpop.permute.xlu0 %164 }
  0x8d   :  { %v208_v5 = vpop.permute.xlu1 %207 }
  0x91   :  { %v213_v6 = vpop.permute.xlu1 %212 }
  0x95   :  { %v218_v7 = vpop.permute.xlu1 %217 }
  0x99   :  { %v223_v13 = vpop.permute.xlu1 %222 }
  0xe6   :  { %v117_v31 = vpop.f32.mrb[0].mxu0 }
  0xe7   :  { %121 = vxpose.xlu0.b32.start.end [1/1] (short) (narrow) %v117_v31, 32  ;;  %v599_v32 = vpop.f32.mrb[1].mxu0 }
 0x11c   :  { %486 = vperm.xlu0 %658, %v480_v34  }
 0x167   :  { %v137_v37 = vpop.trf.xlu0 }
 0x168   :  { %v177_v38 = vadd.f32 %v160_v35, %v137_v37  ;;  %v340_v35 = vld [vmem:[%s891_s5 + $0x8] sm:$0xff]  ;;  %v342_v37 = vld [vmem:[%s891_s5 + $0x18] sm:$0xff] }
 0x16a   :  { %v181_v39 = vmul.f32 0.5, %v177_v38  ;;  %v350_v38 = vpop.permute.xlu1 %349 }
 0x16b   :  { %v138_v40 = vpop.trf.xlu0 }
 0x16c   :  { %660 = vtanh.f32 %v181_v39  ;;  %v178_v41 = vadd.f32 %v165_v36, %v138_v40  ;;  %v341_v36 = vld [vmem:[%s891_s5 + $0x10] sm:$0xff]  ;;  %s712_s5 = smov [#allocation3]  }
 0x16d   :  { %s541_s20 = sshll.u32 %s712_s5, 4  ;;  %s542_s20 = int_to_ptr.vmem [resolvable:$true] %s541_s20 }
 0x16e   :  { %v182_v43 = vmul.f32 0.5, %v178_v41  ;;  %v355_v39 = vpop.permute.xlu1 %354  ;;  %s684_s21 = scalar_lea.vmem %s542_s20, 16  ;;  %s688_s22 = scalar_lea.vmem %s542_s20, 32 }
 0x16f   :  { %v139_v44 = vpop.trf.xlu0  ;;  %p685_p0 = scmp.ne.s32.totalorder %s542_s20, %s684_s21  ;;  %p689_p1 = scmp.lt.s32.totalorder %s542_s20, %s542_s20 }
 0x170   :  { %662 = vtanh.f32 %v182_v43  ;;  %v179_v45 = vadd.f32 %v170_v42, %v139_v44  ;;  %p690_p2 = scmp.lt.s32.totalorder %s688_s22, %s684_s21 }
 0x172   :  { %v183_v46 = vmul.f32 0.5, %v179_v45  ;;  %v360_v40 = vpop.permute.xlu1 %359  ;;  %p691_p3 = por %p690_p2, %p689_p1 }
 0x173   :  { %v140_v48 = vpop.trf.xlu0 }
 0x174   :  { %664 = vtanh.f32 %v183_v46  ;;  %v180_v49 = vadd.f32 %v175_v47, %v140_v48  ;;  %p692_p4 = pnand %p691_p3, %p685_p0 }
 0x176   :  { %v661_v50 = vpop.eup %660  ;;  %v184_v51 = vmul.f32 0.5, %v180_v49  ;;  %v365_v46 = vpop.permute.xlu1 %364 }
 0x177   :  { %v189_v52 = vadd.f32 1.0, %v661_v50 }
 0x178   :  { %666 = vtanh.f32 %v184_v51 }
 0x179   :  { %v193_v55 = vmul.f32 0.5, %v189_v52 }
 0x17a   :  { %v663_v53 = vpop.eup %662 }
 0x17b   :  { %v190_v54 = vadd.f32 1.0, %v663_v53 }
 0x17d   :  { %v194_v56 = vmul.f32 0.5, %v190_v54  ;;  %v492_v54 = vpop.permute.xlu1 %491 }
 0x17e   :  { %v665_v57 = vpop.eup %664 }
 0x17f   :  { %v637_v58 = vpack.c.bf16 %v194_v56, %v193_v55  ;;  %v191_v59 = vadd.f32 1.0, %v665_v57 }
 0x181   :  { %638 = vmatprep.subr.bf16.mxu1 %v637_v58  ;;  %v195_v62 = vmul.f32 0.5, %v191_v59  ;;  %v497_v59 = vpop.permute.xlu1 %496 }
 0x182   :  { %v667_v60 = vpop.eup %666  ;;  %640 = vmatpush3.bf16.msra.mxu1 %v637_v58 }
 0x183   :  { %v192_v61 = vadd.f32 1.0, %v667_v60 }
 0x185   :  { %v196_v63 = vmul.f32 0.5, %v192_v61 }
 0x187   :  { %v641_v0 = vpack.c.bf16 %v196_v63, %v195_v62 }
 0x189   :  { %642 = vmatprep.subr.bf16.mxu1 %v641_v0 }
 0x18a   :  { %644 = vmatpush3.bf16.msra.mxu1 %v641_v0 }
 0x18d   :  { %609 = vmatmul.mubr.msk.f32.vlgmr.msra.gmra.mrb[0].mxu1 %vm225_vm3, %v198_v1 }
 0x18e   :  { %611 = vmatprep.mubr.msk.f32.mxu1 %vm225_vm3, %v199_v2 }
 0x191   :  { %612 = vmatmul.mubr.msk.f32.gmra.mrb[2].mxu1 %vm225_vm3, %v200_v3 }
 0x192   :  { %622 = vmatprep.mubr.msk.f32.mxu1 %vm225_vm3, %v339_v4 }
 0x19b   :  { %v487_v0 = vpop.permute.xlu0 %486 }
 0x260   :  { %v610_v8 = vpop.f32.mrb[0].mxu1 }
 0x261   :  { %v310_v9 = vadd.f32 %v610_v8, %v213_v6  ;;  %v304_v10 = vpop.f32.mrb[1].mxu1 }
 0x262   :  { %v305_v11 = vadd.f32 %v304_v10, %v208_v5 }
 0x263   :  { %v324_v12 = vmul.f32 0.5, %v310_v9  ;;  %v502_v9 = vpop.permute.xlu1 %501 }
 0x264   :  { %v323_v14 = vmul.f32 0.5, %v305_v11  ;;  %v613_v15 = vpop.f32.mrb[2].mxu1 }
 0x265   :  { %668 = vtanh.f32 %v324_v12  ;;  %v320_v16 = vadd.f32 %v613_v15, %v223_v13  ;;  %v314_v17 = vpop.f32.mrb[3].mxu1 }
 0x266   :  { %670 = vtanh.f32 %v323_v14  ;;  %v315_v18 = vadd.f32 %v314_v17, %v218_v7 }
 0x267   :  { %v326_v19 = vmul.f32 0.5, %v320_v16  ;;  %v528_v16 = vlaneseq }
 0x268   :  { %v325_v20 = vmul.f32 0.5, %v315_v18 }
 0x269   :  { %672 = vtanh.f32 %v326_v19  ;;  %v529_v19 = vshrl.u32 %v528_v16, 7 }
 0x26a   :  { %674 = vtanh.f32 %v325_v20 }
 0x26f   :  { %v669_v21 = vpop.eup %668 }
 0x270   :  { %v671_v22 = vpop.eup %670  ;;  %v332_v23 = vadd.f32 1.0, %v669_v21 }
 0x271   :  { %v331_v24 = vadd.f32 1.0, %v671_v22  ;;  %v530_v22 = vsub.s32 0, %v529_v19 }
 0x272   :  { %v336_v25 = vmul.f32 0.5, %v332_v23 }
 0x273   :  { %v673_v26 = vpop.eup %672  ;;  %v335_v27 = vmul.f32 0.5, %v331_v24  ;;  %v526_v24 = vpop.permute.xlu1 %525 }
 0x274   :  { %v675_v28 = vpop.eup %674  ;;  %v334_v29 = vadd.f32 1.0, %v673_v26  ;;  %v531_v26 = vrot.slane %v526_v24, %v530_v22 }
 0x275   :  { %v333_v30 = vadd.f32 1.0, %v675_v28  ;;  %v645_v31 = vpack.c.bf16 %v336_v25, %v335_v27 }
 0x276   :  { %v338_v32 = vmul.f32 0.5, %v334_v29 }
 0x277   :  { %v337_v33 = vmul.f32 0.5, %v333_v30  ;;  %646 = vmatprep.subr.bf16.mxu1 %v645_v31 }
 0x278   :  { %648 = vmatpush3.bf16.msra.mxu1 %v645_v31 }
 0x279   :  { %v649_v34 = vpack.c.bf16 %v338_v32, %v337_v33 }
 0x27b   :  { %650 = vmatprep.subr.bf16.mxu1 %v649_v34 }
 0x27c   :  { %652 = vmatpush3.bf16.msra.mxu1 %v649_v34 }
 0x27f   :  { %623 = vmatmul.mubr.msk.f32.vlgmr.msra.gmra.mrb[4].mxu1 %vm225_vm3, %v340_v35 }
 0x280   :  { %625 = vmatprep.mubr.msk.f32.mxu1 %vm225_vm3, %v341_v36 }
 0x283   :  { %626 = vmatmul.mubr.msk.f32.gmra.mrb[6].mxu1 %vm225_vm3, %v342_v37 }
 0x352   :  { %v624_v41 = vpop.f32.mrb[4].mxu1 }
 0x353   :  { %v451_v42 = vadd.f32 %v624_v41, %v355_v39  ;;  %v445_v43 = vpop.f32.mrb[5].mxu1 }
 0x354   :  { %v446_v44 = vadd.f32 %v445_v43, %v350_v38 }
 0x355   :  { %v465_v45 = vmul.f32 0.5, %v451_v42 }
 0x356   :  { %v464_v47 = vmul.f32 0.5, %v446_v44  ;;  %v627_v48 = vpop.f32.mrb[6].mxu1 }
 0x357   :  { %676 = vtanh.f32 %v465_v45  ;;  %v461_v49 = vadd.f32 %v627_v48, %v365_v46  ;;  %v455_v50 = vpop.f32.mrb[7].mxu1 }
 0x358   :  { %678 = vtanh.f32 %v464_v47  ;;  %v456_v51 = vadd.f32 %v455_v50, %v360_v40 }
 0x359   :  { %v467_v52 = vmul.f32 0.5, %v461_v49 }
 0x35a   :  { %v466_v53 = vmul.f32 0.5, %v456_v51 }
 0x35b   :  { %680 = vtanh.f32 %v467_v52 }
 0x35c   :  { %682 = vtanh.f32 %v466_v53 }
 0x361   :  { %v677_v55 = vpop.eup %676 }
 0x362   :  { %v679_v56 = vpop.eup %678  ;;  %v473_v57 = vadd.f32 1.0, %v677_v55 }
 0x363   :  { %v472_v58 = vadd.f32 1.0, %v679_v56 }
 0x364   :  { %v477_v60 = vmul.f32 0.5, %v473_v57 }
 0x365   :  { %v681_v61 = vpop.eup %680  ;;  %v476_v62 = vmul.f32 0.5, %v472_v58 }
 0x366   :  { %v683_v63 = vpop.eup %682  ;;  %v505_v1 = vmul.f32 %v492_v54, %v477_v60  ;;  %v475_v2 = vadd.f32 1.0, %v681_v61 }
 0x367   :  { %v504_v3 = vmul.f32 %v487_v0, %v476_v62  ;;  %v474_v4 = vadd.f32 1.0, %v683_v63 }
 0x368   :  { %v510_v5 = vsel %vm508_vm4, %v505_v1, 0.0  ;;  %v479_v6 = vmul.f32 0.5, %v475_v2 }
 0x369   :  { %v509_v7 = vsel %vm508_vm4, %v504_v3, 0.0  ;;  %v478_v8 = vmul.f32 0.5, %v474_v4 }
 0x36a   :  { %v511_v10 = vadd.f32 %v510_v5, %v509_v7  ;;  %v507_v11 = vmul.f32 %v502_v9, %v479_v6 }
 0x36b   :  { %v506_v12 = vmul.f32 %v497_v59, %v478_v8 }
 0x36c   :  { %v514_v15 = vsel %vm508_vm4, %v507_v11, 0.0 }
 0x36d   :  { %v512_v13 = vsel %vm508_vm4, %v506_v12, 0.0 }
 0x36e   :  { %v513_v14 = vadd.f32 %v512_v13, %v511_v10 }
 0x370   :  { %v515_v17 = vadd.f32 %v514_v15, %v513_v14 }
 0x372   :  { %v516_v18 = vrot.slane %v515_v17, 4 }
 0x374   :  { %v517_v20 = vadd.f32 %v516_v18, %v515_v17 }
 0x376   :  { %v518_v21 = vrot.slane %v517_v20, 2 }
 0x378   :  { %v519_v23 = vadd.f32 %v518_v21, %v517_v20 }
 0x37a   :  { %v520_v25 = vrot.slane %v519_v23, 1 }
 0x37c   :  { %v521_v27 = vadd.f32 %v520_v25, %v519_v23 }
 0x37e   :  { %v532_v28 = vadd.f32 %v531_v26, %v521_v27 }
 0x380   :  { %534 = vst.msk [vmem:[#allocation3] sm:$0x1] %vm533_vm5, %v532_v28 }
 0x381   :  { %695 = shalt.err (!%p692_p4)
}
 0x382   :  { %s696_s4 = scalar_lea.hbm %s895_s9, 16 }
 0x383   :  { %p697_p5 = scmp.ne.s32.totalorder %s895_s9, %s696_s4  ;;  %p700_p6 = scmp.lt.u32.totalorder %s696_s4, %s895_s9 }
 0x385   :  { %p702_p7 = pnand %p700_p6, %p697_p5 }
 0x387   :  { %705 = shalt.err (!%p702_p7)
}
 0x388   :  { %544 = dma.vmem_to_hbm [thread:$0]  %s542_s20, 16, %s895_s9, [#allocation4]  }
 0x389   :  { %706 = dma.done.wait [#allocation4], 16  }
 0x38a   :  { %707 = vsyncadd [#allocation4], 4294967280 }
 0x38b   :  { %548 = vsyncpa [#allocation4], 1 }

</bundles_post_ra>
